<compile_context>
chip_gen: v6e
topology: v6e:2x2x1
jax: 0.10.0
libtpu: 0.0.40
codegen_flags: <defaults>
</compile_context>

<pallas_src>
import jax
import jax.numpy as jnp
from jax.experimental import pallas as pl
from jax.experimental.pallas import tpu as pltpu

_LANES = 128
_VMEM_BUDGET = 24 * 1024 * 1024  # leave headroom under v7x's 32 MiB scoped default


def _round_up(x, m):
    return ((x + m - 1) // m) * m


def _fused_head_kernel(obs_ref, w_ref, b_ref, out_ref):
    # obs:[TILE_B, D] bf16   w:[D, N_pad] bf16 (pre-transposed, zero-padded)
    # b:[1, N_pad] f32       out:[TILE_B, N_pad] f32 (lane-dense, unmasked vst)
    out_ref[...] = (
        jnp.dot(obs_ref[...], w_ref[...], preferred_element_type=jnp.float32)
        + b_ref[...]
    )


def prepare_actor_critic_params(wa, ba, wc, bc, compute_dtype=jnp.bfloat16):
    """One-time parameter prep (run at init / whenever params change).

    Fuses the actor and critic heads into a single [D, N_pad] matrix
    (pre-transposed from PyTorch nn.Linear layout, zero-padded to a lane-dense
    width) plus a fused f32 bias row.  Doing this once keeps the per-step
    wrapper free of transpose/concat/pad HBM traffic.
    """
    A, D = wa.shape
    N = A + 1
    N_pad = _round_up(N, _LANES)
    w = jnp.concatenate([wa.T, wc.T], axis=1)                       # [D, A+1]
    w = jnp.pad(w, ((0, 0), (0, N_pad - N))).astype(compute_dtype)  # [D, N_pad]
    b = jnp.concatenate([ba.reshape(1, A), bc.reshape(1, 1)], axis=1)
    b = jnp.pad(b, ((0, 0), (0, N_pad - N))).astype(jnp.float32)    # [1, N_pad]
    return w, b, A


def _pick_tile_b(B, D, n_pad, in_bytes):
    """Pick a batch tile: big, VMEM-safe, divisor of B if possible, >=2 steps."""
    # Double-buffered obs + out tiles, double-buffered (grid-invariant) W/bias.
    fixed = 2 * D * n_pad * in_bytes + 2 * n_pad * 4
    per_row = 2 * D * in_bytes + 2 * n_pad * 4
    max_rows = max(8, (_VMEM_BUDGET - fixed) // per_row)
    candidates = [t for t in (1024, 512, 256, 128) if t <= max_rows]
    if not candidates:
        candidates = [max(8, (max_rows // 8) * 8)]
    # Prefer a tile that divides B exactly (no obs pad) with >= 2 grid steps
    # (keeps both v7x TensorCores busy); then any exact divisor; then pad.
    for t in candidates:
        if B % t == 0 and B // t >= 2:
            return t, B
    for t in candidates:
        if B % t == 0:
            return t, B
    for t in candidates:
        if B > t:
            return t, _round_up(B, t)
    t = candidates[-1]
    return t, _round_up(B, t)


def actor_critic_forward(obs, w_fused, b_fused, action_dim, *, min_pallas_batch=256):
    """Fused actor/critic linear heads.

    obs: [B, D] f32 (DummyBody is identity, so feature_dim == state_dim)
    w_fused/b_fused: from prepare_actor_critic_params
    returns (logits [B, A] f32, v [B, 1] f32)
    """
    B, D = obs.shape
    N_pad = w_fused.shape[1]
    A = action_dim
    compute_dtype = w_fused.dtype
    obs_c = obs.astype(compute_dtype)

    if B < min_pallas_batch:
        # Rollout-sized batches: a single-step pallas_call is pure launch +
        # pipeline-prologue overhead; XLA's fused GEMV wins.  Same numerics
        # (bf16 inputs, f32 accumulation, f32 bias).
        out = jnp.dot(obs_c, w_fused, preferred_element_type=jnp.float32) + b_fused
        return out[:, :A], out[:, A:A + 1]

    in_bytes = jnp.dtype(compute_dtype).itemsize
    TILE_B, B_pad = _pick_tile_b(B, D, N_pad, in_bytes)
    # Pad only in the ragged case (divisor-preferring tile choice avoids the
    # full extra obs read+write whenever possible).
    obs_p = jnp.pad(obs_c, ((0, B_pad - B), (0, 0))) if B_pad != B else obs_c

    cost = pl.CostEstimate(
        flops=2 * B_pad * D * N_pad,
        transcendentals=0,
        bytes_accessed=(B_pad * D * in_bytes + D * N_pad * in_bytes
                        + N_pad * 4 + B_pad * N_pad * 4),
    )

    out = pl.pallas_call(
        _fused_head_kernel,
        out_shape=jax.ShapeDtypeStruct((B_pad, N_pad), jnp.float32),
        grid=(B_pad // TILE_B,),
        in_specs=[
            pl.BlockSpec((TILE_B, D), lambda i: (i, 0)),   # obs: tiled over B
            pl.BlockSpec((D, N_pad), lambda i: (0, 0)),    # fused W: grid-invariant
            pl.BlockSpec((1, N_pad), lambda i: (0, 0)),    # fused bias: grid-invariant
        ],
        out_specs=pl.BlockSpec((TILE_B, N_pad), lambda i: (i, 0)),
        compiler_params=pltpu.CompilerParams(
            dimension_semantics=("parallel",)),
        cost_estimate=cost,
    )(obs_p, w_fused, b_fused)

    # TODO(synk): if downstream consumers can read the padded [B_pad, 128]
    # slab directly, skip these slices to avoid the strided re-read.
    logits = out[:B, :A]
    v = out[:B, A:A + 1]
    return logits, v


if __name__ == "__main__":
    state_dim = 32
    action_dim = 8

    key = jax.random.PRNGKey(0)
    k_obs, k_wa, k_wc, k_ba, k_bc = jax.random.split(key, 5)

    # Deterministic synthetic layer_init(nn.Linear(...), 0.001): small-gain
    # weights; small nonzero biases to exercise the fused-bias path.
    wa = 0.001 * jax.random.normal(k_wa, (action_dim, state_dim), dtype=jnp.float32)
    ba = 0.01 * jax.random.normal(k_ba, (action_dim,), dtype=jnp.float32)
    wc = 0.001 * jax.random.normal(k_wc, (1, state_dim), dtype=jnp.float32)
    bc = 0.01 * jax.random.normal(k_bc, (1,), dtype=jnp.float32)

    # One-time parameter prep (outside the per-step forward path).
    w_fused, b_fused, A = prepare_actor_critic_params(wa, ba, wc, bc)

    def ref(obs):
        # Matches kernel numerics: bf16-rounded inputs, f32 accumulate, f32 bias.
        o = obs.astype(w_fused.dtype).astype(jnp.float32)
        out = o @ w_fused.astype(jnp.float32) + b_fused
        return out[:, :A], out[:, A:A + 1]

    # 1) Small rollout batch -> jnp fast path (Pallas would be pure overhead).
    obs_s = jax.random.normal(k_obs, (8, state_dim), dtype=jnp.float32)
    lg_s, v_s = actor_critic_forward(obs_s, w_fused, b_fused, A)

    # 2) B not a multiple of the tile and > 128: padding path + 2-step grid.
    obs_m = jax.random.normal(jax.random.fold_in(k_obs, 1), (200, state_dim),
                              dtype=jnp.float32)
    lg_m, v_m = actor_critic_forward(obs_m, w_fused, b_fused, A, min_pallas_batch=64)

    # 3) B an exact multiple of the tile: no pad, multi-step parallel grid.
    obs_l = jax.random.normal(jax.random.fold_in(k_obs, 2), (256, state_dim),
                              dtype=jnp.float32)
    lg_l, v_l = actor_critic_forward(obs_l, w_fused, b_fused, A, min_pallas_batch=64)

    jax.block_until_ready((lg_s, v_s, lg_m, v_m, lg_l, v_l))

    for obs, lg, v in ((obs_s, lg_s, v_s), (obs_m, lg_m, v_m), (obs_l, lg_l, v_l)):
        rlg, rv = ref(obs)
        assert lg.shape == (obs.shape[0], action_dim)
        assert v.shape == (obs.shape[0], 1)
        assert jnp.allclose(lg, rlg, atol=1e-5, rtol=1e-4)
        assert jnp.allclose(v, rv, atol=1e-5, rtol=1e-4)

    print("KERNEL_OK")
</pallas_src>

<mosaic_0001>
module attributes {stable_mosaic.version = 11 : i64} {
  func.func @_fused_head_kernel(%arg0: i32, %arg1: memref<128x32xbf16, #tpu.memory_space<vmem>>, %arg2: memref<32x128xbf16, #tpu.memory_space<vmem>>, %arg3: memref<1x128xf32, #tpu.memory_space<vmem>>, %arg4: memref<128x128xf32, #tpu.memory_space<vmem>>) attributes {dimension_semantics = [#tpu.dimension_semantics<parallel>], iteration_bounds = array<i64: 2>, scalar_prefetch = 0 : i64, scratch_operands = 0 : i64, tpu.core_type = #tpu.core_type<tc>, window_params = [{transform_indices = @transform_0, window_bounds = array<i64: 128, 32>}, {pipeline_mode = #tpu.pipeline_mode<synchronous>, transform_indices = @transform_1, window_bounds = array<i64: 32, 128>}, {pipeline_mode = #tpu.pipeline_mode<synchronous>, transform_indices = @transform_2, window_bounds = array<i64: 1, 128>}, {transform_indices = @transform_3, window_bounds = array<i64: 128, 128>}]} {
    %c0 = arith.constant 0 : index
    %c0_0 = arith.constant 0 : index
    %0 = vector.load %arg1[%c0, %c0_0] : memref<128x32xbf16, #tpu.memory_space<vmem>>, vector<128x32xbf16>
    %c0_1 = arith.constant 0 : index
    %c0_2 = arith.constant 0 : index
    %1 = vector.load %arg2[%c0_1, %c0_2] : memref<32x128xbf16, #tpu.memory_space<vmem>>, vector<32x128xbf16>
    %cst = arith.constant dense<0.000000e+00> : vector<128x128xf32>
    %2 = tpu.matmul %0, %1, %cst {dimension_numbers = #tpu.dot_dimension_numbers<[1], [0], [0], [1], [0, 0, 1, 1], [], []>} : vector<128x32xbf16>, vector<32x128xbf16>, vector<128x128xf32> -> vector<128x128xf32>
    %c0_3 = arith.constant 0 : index
    %c0_4 = arith.constant 0 : index
    %3 = vector.load %arg3[%c0_3, %c0_4] : memref<1x128xf32, #tpu.memory_space<vmem>>, vector<1x128xf32>
    %4 = vector.broadcast %3 : vector<1x128xf32> to vector<128x128xf32>
    %5 = arith.addf %2, %4 : vector<128x128xf32>
    %c0_5 = arith.constant 0 : index
    %c0_6 = arith.constant 0 : index
    %6 = vector.load %arg4[%c0_5, %c0_6] : memref<128x128xf32, #tpu.memory_space<vmem>>, vector<128x128xf32>
    tpu.vector_store %arg4[%c0_5, %c0_6], %5 {strides = array<i32>} : memref<128x128xf32, #tpu.memory_space<vmem>>, vector<128x128xf32>,
    return
  }
  func.func @transform_0(%arg0: i32) -> (i32, i32) {
    %c0_i32 = arith.constant 0 : i32
    %c0_i32_0 = arith.constant 0 : i32
    return %arg0, %c0_i32 : i32, i32
  }
  func.func @transform_1(%arg0: i32) -> (i32, i32) {
    %c0_i32 = arith.constant 0 : i32
    %c0_i32_0 = arith.constant 0 : i32
    %c0_i32_1 = arith.constant 0 : i32
    return %c0_i32, %c0_i32_0 : i32, i32
  }
  func.func @transform_2(%arg0: i32) -> (i32, i32) {
    %c0_i32 = arith.constant 0 : i32
    %c0_i32_0 = arith.constant 0 : i32
    %c0_i32_1 = arith.constant 0 : i32
    return %c0_i32, %c0_i32_0 : i32, i32
  }
  func.func @transform_3(%arg0: i32) -> (i32, i32) {
    %c0_i32 = arith.constant 0 : i32
    %c0_i32_0 = arith.constant 0 : i32
    return %arg0, %c0_i32 : i32, i32
  }
}

</mosaic_0001>

<bundles_post_ra>
// kernel: tpu_custom_call.1
= control target key start
LH: loop header
LB: loop body
LE: loop exit
PB: predicated region body
PF: predicated region fallthrough
CT: control target
= control target key end

     0   :  { %8 = vsyncpa [#allocation3], 0  ;;  %s809_s0 = inlined_call_operand.vmem [shape: bf16[256,32], index: 0, kind: input, shape index: {}]   ;;  %s810_s1 = inlined_call_operand.vmem [shape: bf16[32,128], index: 1, kind: input, shape index: {}]   ;;  %s811_s2 = inlined_call_operand.vmem [shape: f32[1,128], index: 2, kind: input, shape index: {}]   ;;  %s812_s3 = inlined_call_operand.hbm [shape: f32[256,128], index: 3, kind: output, shape index: {}]  }
   0x1   :  { %10 = vsyncpa [#allocation3 + $0x1], 0  ;;  %s668_s12 = smov 0   ;;  %s670_s13 = smov 0  }
   0x2   :  { %s672_s14 = smov 0   ;;  %s674_s15 = smov 0  }
   0x3 LB: > { %s689_s16 = sadd.s32 4294967295, %s643_s15   ;;  %s466_s17 = sadd.s32 4294967294, %s643_s15   ;;  %s643_s15 = sphi %s674_s15, %s818_s15   ;;  %s639_s14 = sphi %s672_s14, %s817_s14   ;;  %s635_s13 = sphi %s670_s13, %s816_s13   ;;  %s631_s12 = sphi %s668_s12, %s815_s12  }
   0x4   : > { %s693_s18 = sadd.s32 1, %s643_s15   ;;  %s91_s19 = sadd.s32 1, %s639_s14 }
   0x5   : > { %s88_s20 = ssub.s32 %s643_s15, %s693_s18  ;;  %p101_p0 = scmp.ne.s32.totalorder %s639_s14, %s635_s13 }
   0x6   : > { %p89_p1 = scmp.eq.s32.totalorder %s88_s20, 0  ;;  %p102_p2 = scmp.eq.s32.totalorder %s689_s16, 1 }
   0x7   : > { %p107_p3 = scmp.ne.s32.totalorder %s635_s13, %s631_s12  ;;  %p108_p4 = scmp.eq.s32.totalorder %s466_s17, 1 }
   0x8   : > { %s704_s21 = scalar_select %p89_p1, %s639_s14, %s91_s19  }
   0x9   : > { %p706_p5 = por %p102_p2, %p101_p0  ;;  %p710_p6 = por %p108_p4, %p107_p3 }
   0xa   : > { %p469_p7 = scmp.ge.s32.totalorder %s643_s15, 1  ;;  %p141_p8 = scmp.lt.s32.totalorder %s643_s15, 3 }
   0xc   : > { %p142_p9 = pnand %p469_p7, %p141_p8 }
   0xd   : > { %s471_s26 = sshll.u32 (!%p142_p9), %s689_s16, 4  ;;  %s162_s6 = sand.u32 (!%p142_p9), 1, %s635_s13  }
   0xe   : > { %145 = sbr.rel (%p142_p9) target bundleno = 251 (0xfb), region = 32  ;;  %p166_p10 = scmp.lt.s32.totalorder (!%p142_p9), %s471_s26, 31 }
   0xf   : > { %s470_s7 = sshll.u32 (!%p142_p9), %s162_s6, 7  ;;  %s497_s11 = sshll.u32 (!%p142_p9), %s689_s16, 11 }
  0x10   : > { %s740_s10 = scalar_lea.vmem (!%p142_p9), [#allocation2], %s470_s7  ;;  %s760_s24 = scalar_lea.hbm (!%p142_p9), %s812_s3, %s497_s11 }
  0x11   : > { %s404_s17 = sshll.u32 (!%p142_p9), %s740_s10, 4  ;;  %s769_s16 = scalar_lea.sflag (!%p142_p9), [#allocation3], %s162_s6  ;;  %s762_s17 = int_to_ptr.vmem [resolvable:$true] %s404_s17 }
  0x12   : > { %s583_s25 = scalar_lea.vmem (!%p142_p9), %s762_s17, 2048 }
  0x13   : > { %v573_v0 = vld [vmem:[%s810_s1 + $0x8] sm:$0xff]   ;;  %v574_v1 = vld [vmem:[%s810_s1] sm:$0xff]   ;;  %s820_s26 = smov (!%p166_p10, %s471_s26), 31  ;;  %vm252_vm0 = vcmask 261120   ;;  %p584_p11 = scmp.ne.s32.totalorder %s762_s17, %s583_s25 }
  0x14   : > { %508 = vmatprep.subr.bf16.mxu0 %v573_v0  ;;  %528 = vmatprep.subr.bf16.mxu1 %v573_v0  ;;  %s472_s29 = sshll.u32 %s820_s26, 2  ;;  %v473_v10 = vld [vmem:[%s811_s2] ss:$0 sm:$0xff]  ;;  %s645_s26 = smov [#allocation2]  }
  0x15   : > { %509 = vmatpush3.bf16.msra.mxu0 %v573_v0  ;;  %530 = vmatpush3.bf16.msra.mxu1 %v573_v0  ;;  %s169_s5 = scalar_lea.vmem %s809_s0, %s472_s29  ;;  %p585_p12 = pnand %p584_p11, %p706_p5 }
  0x16   : > { %510 = vmatprep.subr.bf16.mxu0 %v574_v1  ;;  %529 = vmatprep.subr.bf16.mxu1 %v574_v1  ;;  %v575_v2 = vld [vmem:[%s169_s5] sm:$0xff]   ;;  %v577_v4 = vld [vmem:[%s169_s5 + $0x8] sm:$0xff]   ;;  %v579_v6 = vld [vmem:[%s169_s5 + $0x10] sm:$0xff]   ;;  %s587_s27 = sshll.u32 %s645_s26, 4  ;;  %s588_s27 = int_to_ptr.vmem [resolvable:$false] %s587_s27 }
  0x17   : > { %v576_v3 = vld [vmem:[%s169_s5 + $0x20] sm:$0xff]   ;;  %512 = vmatprep.mubr.msk.bf16.mxu0 %vm252_vm0, %v575_v2  ;;  %v578_v5 = vld [vmem:[%s169_s5 + $0x28] sm:$0xff]   ;;  %v580_v7 = vld [vmem:[%s169_s5 + $0x30] sm:$0xff]   ;;  %p586_p13 = pneg %p585_p12  ;;  %s589_s28 = scalar_lea.vmem %s588_s27, 4096 }
  0x18   : > { %520 = vmatprep.mubr.msk.bf16.mxu1 %vm252_vm0, %v576_v3  ;;  %v581_v8 = vld [vmem:[%s169_s5 + $0x18] sm:$0xff]   ;;  %p590_p0 = scmp.lt.s32.totalorder %s762_s17, %s588_s27  ;;  %p591_p1 = scmp.lt.s32.totalorder %s589_s28, %s583_s25 }
  0x19   : > { %511 = vmatpush3.bf16.msra.mxu0 %v574_v1  ;;  %531 = vmatpush3.bf16.msra.mxu1 %v574_v1  ;;  %v582_v9 = vld [vmem:[%s169_s5 + $0x38] sm:$0xff]  }
  0x1a   : > { %p592_p2 = por %p591_p1, %p590_p0 }
  0x1c   : > { %513 = vmatmul.mubr.msk.bf16.vlgmr.msra.gmra.mxu0 %vm252_vm0, %v577_v4  ;;  %521 = vmatmul.mubr.msk.bf16.vlgmr.msra.gmra.mxu1 %vm252_vm0, %v578_v5  ;;  %p593_p3 = pnand %p592_p2, %p586_p13 }
  0x1d   : > { %516 = vmatprep.mubr.msk.bf16.mxu0 %vm252_vm0, %v579_v6  ;;  %524 = vmatprep.mubr.msk.bf16.mxu1 %vm252_vm0, %v580_v7 }
  0x24   : > { %517 = vmatmul.mubr.msk.bf16.gmra.mxu0 %vm252_vm0, %v581_v8  ;;  %525 = vmatmul.mubr.msk.bf16.gmra.mxu1 %vm252_vm0, %v582_v9 }
  0xdc   : > { %v514_v11 = vpop.f32.mrf.mxu0  ;;  %v522_v13 = vpop.f32.mrf.mxu1 }
  0xdd   : > { %v320_v12 = vadd.f32 %v514_v11, %v473_v10  ;;  %v352_v14 = vadd.f32 %v522_v13, %v473_v10 }
  0xde   : > { %v311_v15 = vpop.f32.mrf.mxu0  ;;  %v343_v17 = vpop.f32.mrf.mxu1 }
  0xdf   : > { %376 = vst [vmem:[%s740_s10 + $0x10] sm:$0xff] %v320_v12  ;;  %v312_v16 = vadd.f32 %v473_v10, %v311_v15  ;;  %384 = vst [vmem:[%s740_s10 + $0x50] sm:$0xff] %v352_v14  ;;  %v344_v18 = vadd.f32 %v473_v10, %v343_v17 }
  0xe0   : > { %v515_v19 = vpop.f32.mrf.mxu0  ;;  %v523_v21 = vpop.f32.mrf.mxu1 }
  0xe1   : > { %374 = vst [vmem:[%s740_s10] sm:$0xff] %v312_v16  ;;  %v323_v20 = vadd.f32 %v515_v19, %v473_v10  ;;  %382 = vst [vmem:[%s740_s10 + $0x40] sm:$0xff] %v344_v18  ;;  %v355_v22 = vadd.f32 %v523_v21, %v473_v10 }
  0xe2   : > { %v314_v23 = vpop.f32.mrf.mxu0  ;;  %v346_v25 = vpop.f32.mrf.mxu1 }
  0xe3   : > { %377 = vst [vmem:[%s740_s10 + $0x18] sm:$0xff] %v323_v20  ;;  %v315_v24 = vadd.f32 %v473_v10, %v314_v23  ;;  %385 = vst [vmem:[%s740_s10 + $0x58] sm:$0xff] %v355_v22  ;;  %v347_v26 = vadd.f32 %v473_v10, %v346_v25 }
  0xe4   : > { %v518_v27 = vpop.f32.mrf.mxu0  ;;  %v526_v29 = vpop.f32.mrf.mxu1 }
  0xe5   : > { %375 = vst [vmem:[%s740_s10 + $0x8] sm:$0xff] %v315_v24  ;;  %v336_v28 = vadd.f32 %v518_v27, %v473_v10  ;;  %383 = vst [vmem:[%s740_s10 + $0x48] sm:$0xff] %v347_v26  ;;  %v368_v30 = vadd.f32 %v526_v29, %v473_v10 }
  0xe6   : > { %v327_v31 = vpop.f32.mrf.mxu0  ;;  %v359_v33 = vpop.f32.mrf.mxu1 }
  0xe7   : > { %380 = vst [vmem:[%s740_s10 + $0x30] sm:$0xff] %v336_v28  ;;  %v328_v32 = vadd.f32 %v473_v10, %v327_v31  ;;  %388 = vst [vmem:[%s740_s10 + $0x70] sm:$0xff] %v368_v30  ;;  %v360_v34 = vadd.f32 %v473_v10, %v359_v33 }
  0xe8   : > { %v519_v35 = vpop.f32.mrf.mxu0  ;;  %v527_v37 = vpop.f32.mrf.mxu1 }
  0xe9   : > { %378 = vst [vmem:[%s740_s10 + $0x20] sm:$0xff] %v328_v32  ;;  %v339_v36 = vadd.f32 %v519_v35, %v473_v10  ;;  %386 = vst [vmem:[%s740_s10 + $0x60] sm:$0xff] %v360_v34  ;;  %v371_v38 = vadd.f32 %v527_v37, %v473_v10 }
  0xea   : > { %v330_v39 = vpop.f32.mrf.mxu0  ;;  %v362_v41 = vpop.f32.mrf.mxu1 }
  0xeb   : > { %381 = vst [vmem:[%s740_s10 + $0x38] sm:$0xff] %v339_v36  ;;  %v331_v40 = vadd.f32 %v473_v10, %v330_v39  ;;  %389 = vst [vmem:[%s740_s10 + $0x78] sm:$0xff] %v371_v38  ;;  %v363_v42 = vadd.f32 %v473_v10, %v362_v41 }
  0xed   : > { %379 = vst [vmem:[%s740_s10 + $0x28] sm:$0xff] %v331_v40  ;;  %387 = vst [vmem:[%s740_s10 + $0x68] sm:$0xff] %v363_v42 }
  0xee   : > { %596 = shalt.err (!%p593_p3)
}
  0xef   : > { %s597_s29 = scalar_lea.hbm %s760_s24, 2048  ;;  %s601_s5 = scalar_lea.hbm %s812_s3, 4096 }
  0xf0   : > { %p598_p4 = scmp.ne.s32.totalorder %s760_s24, %s597_s29  ;;  %p602_p9 = scmp.lt.s32.totalorder %s760_s24, %s812_s3 }
  0xf1   : > { %p603_p10 = scmp.lt.s32.totalorder %s601_s5, %s597_s29 }
  0xf2   : > { %p599_p7 = pnand %p598_p4, %p706_p5 }
  0xf3   : > { %p604_p11 = por %p603_p10, %p602_p9 }
  0xf4   : > { %p600_p8 = pneg %p599_p7 }
  0xf6   : > { %p605_p12 = pnand %p604_p11, %p600_p8 }
  0xf8   : > { %608 = shalt.err (!%p605_p12)
}
  0xf9   : > { %s646_s8 = smov 128   ;;  %s647_s9 = smov 8  }
  0xfa   : > { %532 = dma.vmem_to_hbm [thread:$0]  (%p706_p5), %s762_s17, 2048, %s760_s24, %s769_s16, %s646_s8, %s646_s8, %s647_s9  }
  0xfb PF: > { %p538_p13 = scmp.ge.s32.totalorder %s643_s15, 2  ;;  %s419_s10 = sand.u32 1, %s631_s12  }
  0xfc   : > { %s420_s11 = scalar_lea.sflag [#allocation3], %s419_s10 }
  0xfd   : > { %p535_p0 = pnand %p538_p13, %p710_p6 }
  0xff   : > { %p536_p1 = pneg %p535_p0 }
 0x101   : > { %626 = dma.done.wait (%p536_p1), %s420_s11, 2048  }
 0x102   : > { %628 = vsyncadd (%p536_p1), %s420_s11, 4294965248  ;;  %p13_p2 = scmp.ge.s32.totalorder %s693_s18, 4   ;;  %s815_s12 = smov %s635_s13 }
 0x103   : > { %s816_s13 = smov %s639_s14  ;;  %s817_s14 = smov %s704_s21 }
 0x104   : > { %s818_s15 = smov %s693_s18  ;;  %15 = sbr.rel (!%p13_p2) target bundleno = 3 (0x3), region = 67 }
 0x109   :  { %425 = vsyncpa [#allocation3], 1 }
 0x10a   :  { %427 = vsyncpa [#allocation3 + $0x1], 1 }

</bundles_post_ra>
